<compile_context>
chip_gen: v7x
topology: tpu7x:2x2x1
jax: 0.10.0
libtpu: 0.0.40
codegen_flags: <defaults>
</compile_context>

<pallas_src>
import functools

import jax
import jax.numpy as jnp
from jax.experimental import pallas as pl
from jax.experimental.pallas import tpu as pltpu

_EPS = 1e-5  # nn.LayerNorm default eps


def _default_vmem_limit_bytes():
    """~3/4 of physical VMEM, capped at 96 MiB (v5e/v6e); ~48 MiB on v7x."""
    try:
        cap = int(pltpu.get_tpu_info().vmem_capacity_bytes)
    except Exception:
        cap = 64 * 1024 * 1024
    return int(min((cap * 3) // 4, 96 * 1024 * 1024))


_VMEM_LIMIT_BYTES = _default_vmem_limit_bytes()


def _prenorm_kernel(x_ref, w_ref, b_ref, o_ref):
    """Normalize a (TM, D) row tile in f32, then bf16 MXU matmul (f32 accum).

    The LayerNorm affine (gamma, beta) is pre-folded into w_ref / b_ref by the
    wrapper, so the kernel only computes xn = (x - mu) * rsqrt(var + eps).

    x_ref: (TM, D)  row tile of the flattened (B*S, D) activations
    w_ref: (D, D)   folded Linear weight, bf16, (in, out) layout -> xn @ W
    b_ref: (1, D)   folded bias (f32)
    o_ref: (TM, D)
    """
    x = x_ref[...].astype(jnp.float32)

    # Single-pass moments: mean and E[x^2] reduce back-to-back on the XLU.
    mu = jnp.mean(x, axis=-1, keepdims=True)
    ex2 = jnp.mean(x * x, axis=-1, keepdims=True)
    var = ex2 - mu * mu
    inv = jax.lax.rsqrt(var + _EPS)
    xn = (x - mu) * inv

    # fn = Linear(D, D): bf16 operands on the MXU, f32 accumulation.
    y = jnp.dot(xn.astype(w_ref.dtype), w_ref[...],
                preferred_element_type=jnp.float32)
    o_ref[...] = (y + b_ref[...]).astype(o_ref.dtype)


def _pick_row_tile(tm, rows):
    """Sublane/MXU-friendly row tile; best-effort even step count for v7x."""
    if tm >= rows:
        return rows
    if tm >= 256:
        tm = (tm // 256) * 256
    elif tm >= 16:
        tm = (tm // 16) * 16
    else:
        tm = 8
    steps = -(-rows // tm)
    if 1 < steps <= 8 and steps % 2 == 1:
        # Odd, small step count leaves one v7x TensorCore idle on the last
        # tile; shrink the tile to get an even split when possible.
        cand = -(-rows // (steps + 1))
        align = 256 if cand >= 256 else (16 if cand >= 16 else 8)
        cand = -(-cand // align) * align
        if 0 < cand < tm:
            tm = cand
    return min(tm, rows)


@functools.partial(jax.jit, static_argnames=("tm",))
def prenorm_forward(x, gamma, beta, w, b, *, tm=1024):
    """PreNorm forward with fn = Linear(D, D): out = LayerNorm(x) @ W + b.

    x: (B, S, D).  Output dtype follows x (pass bf16 activations to halve HBM
    traffic on v6e/v7x; LayerNorm math stays f32 in-kernel either way).
    W is stored (in, out) so the kernel computes xn @ W.
    """
    B, S, D = x.shape
    R = B * S

    # Fold the LayerNorm affine into the Linear parameters.  Math identity:
    #   (xn*gamma + beta) @ W + b == xn @ (gamma[:,None]*W) + (beta @ W + b)
    # Compute the fold in f32 and cast the weight to bf16 exactly once.
    w_f32 = w.astype(jnp.float32)
    gamma_f32 = gamma.reshape(D).astype(jnp.float32)
    beta_f32 = beta.reshape(D).astype(jnp.float32)
    w_folded = (gamma_f32[:, None] * w_f32).astype(jnp.bfloat16)
    b_folded = (beta_f32 @ w_f32 + b.reshape(D).astype(jnp.float32)).reshape(1, D)

    x2 = x.reshape(R, D)
    tm = _pick_row_tile(tm, R)
    grid = (pl.cdiv(R, tm),)

    out2 = pl.pallas_call(
        _prenorm_kernel,
        out_shape=jax.ShapeDtypeStruct((R, D), x.dtype),
        grid_spec=pltpu.PrefetchScalarGridSpec(
            num_scalar_prefetch=0,
            grid=grid,
            in_specs=[
                # Activations stream through VMEM (double-buffered by default).
                pl.BlockSpec((tm, D), lambda i: (i, 0)),
                # Resident operands: constant index_map + single buffering.
                pl.BlockSpec((D, D), lambda i: (0, 0),
                             pipeline_mode=pl.Buffered(1)),
                pl.BlockSpec((1, D), lambda i: (0, 0),
                             pipeline_mode=pl.Buffered(1)),
            ],
            out_specs=pl.BlockSpec((tm, D), lambda i: (i, 0)),
        ),
        compiler_params=pltpu.CompilerParams(
            dimension_semantics=("parallel",),   # megacore split on v7x
            vmem_limit_bytes=_VMEM_LIMIT_BYTES,
        ),
    )(x2, w_folded, b_folded)

    return out2.reshape(B, S, D)


def _reference(x, gamma, beta, w, b):
    """Pure-JAX f32 reference (unfolded params) for sanity checking."""
    x = x.astype(jnp.float32)
    mu = jnp.mean(x, axis=-1, keepdims=True)
    var = jnp.mean((x - mu) ** 2, axis=-1, keepdims=True)
    xn = (x - mu) * jax.lax.rsqrt(var + _EPS) * gamma + beta
    return xn @ w + b


if __name__ == "__main__":
    key = jax.random.PRNGKey(0)
    k_x, k_g, k_b, k_w, k_lb = jax.random.split(key, 5)

    # Small ViT-like token stream; D=128 exercises a full lane width and
    # tm=16 gives a 2-step (multi-tile) pipeline.
    B, S, D = 2, 16, 128
    x = jax.random.normal(k_x, (B, S, D), dtype=jnp.float32)

    # nn.LayerNorm params (randomized to exercise the folded affine).
    gamma = 1.0 + 0.1 * jax.random.normal(k_g, (D,), dtype=jnp.float32)
    beta = 0.1 * jax.random.normal(k_b, (D,), dtype=jnp.float32)

    # fn = Linear(D, D) parameters, stored (in, out) so the kernel does xn @ W.
    w = jax.random.normal(k_w, (D, D), dtype=jnp.float32) / jnp.sqrt(D)
    b = 0.1 * jax.random.normal(k_lb, (D,), dtype=jnp.float32)

    ref = _reference(x, gamma, beta, w, b)

    # f32 activations (bf16 MXU operands, f32 accumulation).
    out = prenorm_forward(x, gamma, beta, w, b, tm=16)
    out = jax.block_until_ready(out)
    assert out.shape == (B, S, D)
    assert out.dtype == x.dtype
    assert jnp.allclose(out, ref, atol=2e-2, rtol=2e-2), "f32 mismatch vs reference"

    # bf16 activation streaming (the big HBM-bandwidth lever on v6e/v7x).
    out_bf16 = prenorm_forward(x.astype(jnp.bfloat16), gamma, beta, w, b, tm=16)
    out_bf16 = jax.block_until_ready(out_bf16)
    assert out_bf16.dtype == jnp.bfloat16
    assert jnp.allclose(out_bf16.astype(jnp.float32), ref, atol=1e-1, rtol=1e-1), \
        "bf16 mismatch vs reference"

    print("KERNEL_OK")
</pallas_src>

<mosaic_0001>
module attributes {stable_mosaic.version = 11 : i64} {
  func.func @_prenorm_kernel(%arg0: i32, %arg1: memref<16x128xf32, #tpu.memory_space<vmem>>, %arg2: memref<128x128xbf16, #tpu.memory_space<vmem>>, %arg3: memref<1x128xf32, #tpu.memory_space<vmem>>, %arg4: memref<16x128xf32, #tpu.memory_space<vmem>>) attributes {dimension_semantics = [#tpu.dimension_semantics<parallel>], iteration_bounds = array<i64: 2>, scalar_prefetch = 0 : i64, scratch_operands = 0 : i64, tpu.core_type = #tpu.core_type<tc>, window_params = [{transform_indices = @transform_0, window_bounds = array<i64: 16, 128>}, {pipeline_mode = #tpu.pipeline_mode<synchronous>, transform_indices = @transform_1, window_bounds = array<i64: 128, 128>}, {pipeline_mode = #tpu.pipeline_mode<synchronous>, transform_indices = @transform_2, window_bounds = array<i64: 1, 128>}, {transform_indices = @transform_3, window_bounds = array<i64: 16, 128>}]} {
    %c0 = arith.constant 0 : index
    %c0_0 = arith.constant 0 : index
    %0 = vector.load %arg1[%c0, %c0_0] : memref<16x128xf32, #tpu.memory_space<vmem>>, vector<16x128xf32>
    %cst = arith.constant dense<0.000000e+00> : vector<16xf32>
    %1 = vector.multi_reduction <add>, %0, %cst [1] : vector<16x128xf32> to vector<16xf32>
    %2 = vector.shape_cast %1 : vector<16xf32> to vector<16x1xf32>
    %cst_1 = arith.constant 1.280000e+02 : f32
    %3 = vector.broadcast %cst_1 : f32 to vector<16x1xf32>
    %4 = arith.divf %2, %3 : vector<16x1xf32>
    %5 = arith.mulf %0, %0 : vector<16x128xf32>
    %cst_2 = arith.constant dense<0.000000e+00> : vector<16xf32>
    %6 = vector.multi_reduction <add>, %5, %cst_2 [1] : vector<16x128xf32> to vector<16xf32>
    %7 = vector.shape_cast %6 : vector<16xf32> to vector<16x1xf32>
    %cst_3 = arith.constant 1.280000e+02 : f32
    %8 = vector.broadcast %cst_3 : f32 to vector<16x1xf32>
    %9 = arith.divf %7, %8 : vector<16x1xf32>
    %10 = arith.mulf %4, %4 : vector<16x1xf32>
    %11 = arith.subf %9, %10 : vector<16x1xf32>
    %cst_4 = arith.constant 9.99999974E-6 : f32
    %12 = vector.broadcast %cst_4 : f32 to vector<16x1xf32>
    %13 = arith.addf %11, %12 : vector<16x1xf32>
    %14 = math.rsqrt %13 : vector<16x1xf32>
    %15 = vector.broadcast %4 : vector<16x1xf32> to vector<16x128xf32>
    %16 = arith.subf %0, %15 : vector<16x128xf32>
    %17 = vector.broadcast %14 : vector<16x1xf32> to vector<16x128xf32>
    %18 = arith.mulf %16, %17 : vector<16x128xf32>
    %19 = arith.truncf %18 : vector<16x128xf32> to vector<16x128xbf16>
    %c0_5 = arith.constant 0 : index
    %c0_6 = arith.constant 0 : index
    %20 = vector.load %arg2[%c0_5, %c0_6] : memref<128x128xbf16, #tpu.memory_space<vmem>>, vector<128x128xbf16>
    %cst_7 = arith.constant dense<0.000000e+00> : vector<16x128xf32>
    %21 = tpu.matmul %19, %20, %cst_7 {dimension_numbers = #tpu.dot_dimension_numbers<[1], [0], [0], [1], [0, 0, 1, 1], [], []>} : vector<16x128xbf16>, vector<128x128xbf16>, vector<16x128xf32> -> vector<16x128xf32>
    %c0_8 = arith.constant 0 : index
    %c0_9 = arith.constant 0 : index
    %22 = vector.load %arg3[%c0_8, %c0_9] : memref<1x128xf32, #tpu.memory_space<vmem>>, vector<1x128xf32>
    %23 = vector.broadcast %22 : vector<1x128xf32> to vector<16x128xf32>
    %24 = arith.addf %21, %23 : vector<16x128xf32>
    %c0_10 = arith.constant 0 : index
    %c0_11 = arith.constant 0 : index
    %25 = vector.load %arg4[%c0_10, %c0_11] : memref<16x128xf32, #tpu.memory_space<vmem>>, vector<16x128xf32>
    tpu.vector_store %arg4[%c0_10, %c0_11], %24 {strides = array<i32>} : memref<16x128xf32, #tpu.memory_space<vmem>>, vector<16x128xf32>,
    return
  }
  func.func @transform_0(%arg0: i32) -> (i32, i32) {
    %c0_i32 = arith.constant 0 : i32
    %c0_i32_0 = arith.constant 0 : i32
    return %arg0, %c0_i32 : i32, i32
  }
  func.func @transform_1(%arg0: i32) -> (i32, i32) {
    %c0_i32 = arith.constant 0 : i32
    %c0_i32_0 = arith.constant 0 : i32
    %c0_i32_1 = arith.constant 0 : i32
    return %c0_i32, %c0_i32_0 : i32, i32
  }
  func.func @transform_2(%arg0: i32) -> (i32, i32) {
    %c0_i32 = arith.constant 0 : i32
    %c0_i32_0 = arith.constant 0 : i32
    %c0_i32_1 = arith.constant 0 : i32
    return %c0_i32, %c0_i32_0 : i32, i32
  }
  func.func @transform_3(%arg0: i32) -> (i32, i32) {
    %c0_i32 = arith.constant 0 : i32
    %c0_i32_0 = arith.constant 0 : i32
    return %arg0, %c0_i32 : i32, i32
  }
}

</mosaic_0001>

<bundles_post_ra>
// kernel: prenorm_forward.1
= control target key start
LH: loop header
LB: loop body
LE: loop exit
PB: predicated region body
PF: predicated region fallthrough
CT: control target
= control target key end

     0   :  { %8 = vsyncpa [#allocation3], 0  ;;  %s717_s0 = inlined_call_operand.vmem [shape: f32[32,128], index: 0, kind: input, shape index: {}]   ;;  %s718_s1 = inlined_call_operand.vmem [shape: bf16[128,128], index: 1, kind: input, shape index: {}]   ;;  %s719_s2 = inlined_call_operand.vmem [shape: f32[1,128], index: 2, kind: input, shape index: {}]   ;;  %s720_s3 = inlined_call_operand.hbm [shape: f32[32,128], index: 3, kind: output, shape index: {}]  }
   0x1   :  { %10 = vsyncpa [#allocation3 + $0x1], 0  ;;  %s588_s12 = smov 0   ;;  %s590_s13 = smov 0  }
   0x2   :  { %s592_s14 = smov 0   ;;  %s594_s15 = smov 0  }
   0x3 LB: > { %s609_s16 = sadd.s32 4294967295, %s561_s15   ;;  %s393_s17 = sadd.s32 4294967294, %s561_s15   ;;  %s561_s15 = sphi %s594_s15, %s726_s15   ;;  %s557_s14 = sphi %s592_s14, %s725_s14   ;;  %s553_s13 = sphi %s590_s13, %s724_s13   ;;  %s549_s12 = sphi %s588_s12, %s723_s12  }
   0x4   : > { %s613_s18 = sadd.s32 1, %s561_s15   ;;  %s91_s19 = sadd.s32 1, %s557_s14 }
   0x5   : > { %s88_s20 = ssub.s32 %s561_s15, %s613_s18  ;;  %p101_p0 = scmp.ne.s32.totalorder %s557_s14, %s553_s13 }
   0x6   : > { %p89_p1 = scmp.eq.s32.totalorder %s88_s20, 0  ;;  %p102_p2 = scmp.eq.s32.totalorder %s609_s16, 1 }
   0x7   : > { %p107_p3 = scmp.ne.s32.totalorder %s553_s13, %s549_s12  ;;  %p108_p4 = scmp.eq.s32.totalorder %s393_s17, 1 }
   0x8   : > { %s624_s21 = scalar_select %p89_p1, %s557_s14, %s91_s19  }
   0x9   : > { %p626_p5 = por %p102_p2, %p101_p0  ;;  %p630_p6 = por %p108_p4, %p107_p3 }
   0xa   : > { %p396_p7 = scmp.ge.s32.totalorder %s561_s15, 1  ;;  %p141_p8 = scmp.lt.s32.totalorder %s561_s15, 3 }
   0xc   : > { %p142_p9 = pnand %p396_p7, %p141_p8 }
   0xd   : > { %s398_s24 = sshll.u32 (!%p142_p9), %s609_s16, 1  ;;  %v563_v0 = vmov (!%p142_p9), 0.0   ;;  %v487_v1 = vld [vmem:[%s718_s1] sm:$0xff] (!%p142_p9)   ;;  %v488_v6 = vld [vmem:[%s718_s1 + $0x8] sm:$0xff] (!%p142_p9)   ;;  %v489_v7 = vld [vmem:[%s718_s1 + $0x10] sm:$0xff] (!%p142_p9)   ;;  %vm564_vm0 = vmmov (!%p142_p9), 0  }
   0xe   : > { %145 = sbr.rel (%p142_p9) target bundleno = 425 (0x1a9), region = 32  ;;  %p166_p10 = scmp.lt.s32.totalorder (!%p142_p9), %s398_s24, 3  ;;  %424 = vmatprep.subr.bf16.mxu0 (!%p142_p9), %v563_v0  ;;  %v490_v8 = vld [vmem:[%s718_s1 + $0x18] sm:$0xff] (!%p142_p9)   ;;  %v491_v9 = vld [vmem:[%s718_s1 + $0x20] sm:$0xff] (!%p142_p9)   ;;  %v492_v10 = vld [vmem:[%s718_s1 + $0x28] sm:$0xff] (!%p142_p9)   ;;  %440 = vmatprep.mubr.msk.bf16.mxu0 (!%p142_p9), %vm564_vm0, %v563_v0 }
   0xf   : > { %425 = vmatpush3.bf16.msra.mxu0 (!%p142_p9), %v487_v1  ;;  %v493_v11 = vld [vmem:[%s718_s1 + $0x30] sm:$0xff] (!%p142_p9)   ;;  %v494_v12 = vld [vmem:[%s718_s1 + $0x38] sm:$0xff] (!%p142_p9)   ;;  %v400_v34 = vld [vmem:[%s719_s2] ss:$0 sm:$0xff] (!%p142_p9)  ;;  %s414_s6 = sshll.u32 (!%p142_p9), %s609_s16, 8  ;;  %s565_s11 = smov (!%p142_p9), [#allocation2]  }
  0x10   : > { %426 = vmatprep.subr.bf16.mxu0 (!%p142_p9), %v563_v0  ;;  %s674_s9 = scalar_lea.hbm (!%p142_p9), %s720_s3, %s414_s6  ;;  %s503_s17 = sshll.u32 (!%p142_p9), %s565_s11, 4  ;;  %s504_s17 = int_to_ptr.vmem [resolvable:$false] %s503_s17 }
  0x11   : > { %s505_s19 = scalar_lea.vmem (!%p142_p9), %s504_s17, 512 }
  0x13   : > { %427 = vmatpush3.bf16.msra.mxu0 (!%p142_p9), %v488_v6 }
  0x14   : > { %428 = vmatprep.subr.bf16.mxu0 (!%p142_p9), %v563_v0 }
  0x15   : > { %s728_s24 = smov (!%p166_p10, %s398_s24), 3 }
  0x16   : > { %s399_s27 = sshll.u32 %s728_s24, 3 }
  0x17   : > { %s169_s30 = scalar_lea.vmem %s717_s0, %s399_s27  ;;  %429 = vmatpush3.bf16.msra.mxu0 %v489_v7  ;;  %s162_s27 = sand.u32 1, %s553_s13  }
  0x18   : > { %v173_v2 = vld [vmem:[%s169_s30] sm:$0xff]  ;;  %v174_v3 = vld [vmem:[%s169_s30 + $0x8] sm:$0xff]  ;;  %430 = vmatprep.subr.bf16.mxu0 %v563_v0  ;;  %s397_s28 = sshll.u32 %s162_s27, 4  ;;  %s676_s10 = scalar_lea.sflag [#allocation3], %s162_s27 }
  0x19   : > { %175 = vadd.xlane.f32.xlu0 %v173_v2  ;;  %v182_v4 = vmul.f32 %v173_v2, %v173_v2  ;;  %v183_v5 = vmul.f32 %v174_v3, %v174_v3  ;;  %s164_s4 = scalar_lea.vmem [#allocation2], %s397_s28 }
  0x1a   : > { %s331_s5 = sshll.u32 %s164_s4, 4  ;;  %s669_s5 = int_to_ptr.vmem [resolvable:$true] %s331_s5 }
  0x1b   : > { %184 = vadd.xlane.f32.xlu1 %v182_v4  ;;  %431 = vmatpush3.bf16.msra.mxu0 %v490_v8  ;;  %s499_s16 = scalar_lea.vmem %s669_s5, 256  ;;  %p506_p0 = scmp.lt.s32.totalorder %s669_s5, %s504_s17 }
  0x1c   : > { %432 = vmatprep.subr.bf16.mxu0 %v563_v0  ;;  %p500_p11 = scmp.ne.s32.totalorder %s669_s5, %s499_s16  ;;  %p507_p1 = scmp.lt.s32.totalorder %s505_s19, %s499_s16 }
  0x1d   : > { %177 = vadd.xlane.f32.xlu0 %v174_v3 }
  0x1e   : > { %p501_p12 = pnand %p500_p11, %p626_p5  ;;  %p508_p2 = por %p507_p1, %p506_p0 }
  0x1f   : > { %186 = vadd.xlane.f32.xlu1 %v183_v5  ;;  %433 = vmatpush3.bf16.msra.mxu0 %v491_v9 }
  0x20   : > { %434 = vmatprep.subr.bf16.mxu0 %v563_v0  ;;  %p502_p13 = pneg %p501_p12 }
  0x22   : > { %p509_p3 = pnand %p508_p2, %p502_p13 }
  0x23   : > { %435 = vmatpush3.bf16.msra.mxu0 %v492_v10 }
  0x24   : > { %436 = vmatprep.subr.bf16.mxu0 %v563_v0 }
  0x27   : > { %437 = vmatpush3.bf16.msra.mxu0 %v493_v11 }
  0x28   : > { %438 = vmatprep.subr.bf16.mxu0 %v563_v0 }
  0x2b   : > { %439 = vmatpush3.bf16.msra.mxu0 %v494_v12 }
  0xa6   : > { %v176_v13 = vpop.xlane.xlu0 %175 }
  0xa7   : > { %v180_v14 = vmul.f32 0.0078125, %v176_v13 }
  0xa8   : > { %v185_v15 = vpop.xlane.xlu1 %184 }
  0xa9   : > { %v190_v16 = vmul.f32 %v180_v14, %v180_v14  ;;  %v188_v17 = vmul.f32 0.0078125, %v185_v15  ;;  %v198_v28 = vsub.f32 %v173_v2, %v180_v14 }
  0xaa   : > { %v178_v18 = vpop.xlane.xlu0 %177 }
  0xab   : > { %v192_v19 = vsub.f32 %v188_v17, %v190_v16  ;;  %v181_v20 = vmul.f32 0.0078125, %v178_v18 }
  0xac   : > { %v187_v21 = vpop.xlane.xlu1 %186 }
  0xad   : > { %v194_v22 = vadd.f32 1e-05, %v192_v19  ;;  %v191_v23 = vmul.f32 %v181_v20, %v181_v20  ;;  %v189_v24 = vmul.f32 0.0078125, %v187_v21  ;;  %v199_v29 = vsub.f32 %v174_v3, %v181_v20 }
  0xaf   : > { %v193_v25 = vsub.f32 %v189_v24, %v191_v23  ;;  %495 = vrsqrt.f32 %v194_v22 }
  0xb1   : > { %v195_v26 = vadd.f32 1e-05, %v193_v25 }
  0xb3   : > { %497 = vrsqrt.f32 %v195_v26 }
  0xb9   : > { %v496_v27 = vpop.eup %495 }
  0xba   : > { %v200_v31 = vmul.f32 %v496_v27, %v198_v28 }
  0xbd   : > { %v498_v30 = vpop.eup %497 }
  0xbe   : > { %v201_v32 = vmul.f32 %v498_v30, %v199_v29 }
  0xc0   : > { %v202_v33 = vpack.c.bf16 %v201_v32, %v200_v31 }
  0xc2   : > { %441 = vmatmul.mubr.bf16.vlgmr.msra.gmra.mrb[0].mxu0 %v202_v33 }
 0x195   : > { %v308_v35 = vpop.f32.mrb[0].mxu0 }
 0x196   : > { %v309_v36 = vadd.f32 %v400_v34, %v308_v35  ;;  %v442_v37 = vpop.f32.mrb[1].mxu0 }
 0x197   : > { %v311_v38 = vpop.f32.mrb[2].mxu0 }
 0x198   : > { %315 = vst [vmem:[%s164_s4] sm:$0xff] %v309_v36  ;;  %v312_v39 = vadd.f32 %v400_v34, %v311_v38  ;;  %v443_v40 = vpop.f32.mrb[3].mxu0 }
 0x19a   : > { %316 = vst [vmem:[%s164_s4 + $0x8] sm:$0xff] %v312_v39 }
 0x19b   : > { %512 = shalt.err (!%p509_p3)
}
 0x19c   : > { %s513_s20 = scalar_lea.hbm %s674_s9, 256  ;;  %s517_s26 = scalar_lea.hbm %s720_s3, 512 }
 0x19d   : > { %p514_p4 = scmp.ne.s32.totalorder %s674_s9, %s513_s20  ;;  %p518_p9 = scmp.lt.u32.totalorder %s674_s9, %s720_s3 }
 0x19e   : > { %p519_p10 = scmp.lt.u32.totalorder %s517_s26, %s513_s20  ;;  %p521_p12 = scmp.lt.u32.totalorder %s513_s20, %s674_s9 }
 0x19f   : > { %p515_p7 = pnand %p514_p4, %p626_p5 }
 0x1a0   : > { %p520_p11 = por %p519_p10, %p518_p9 }
 0x1a1   : > { %p516_p8 = pneg %p515_p7 }
 0x1a2   : > { %p522_p13 = por %p521_p12, %p520_p11 }
 0x1a4   : > { %p523_p0 = pnand %p522_p13, %p516_p8 }
 0x1a6   : > { %526 = shalt.err (!%p523_p0)
}
 0x1a7   : > { %s566_s29 = smov 128   ;;  %s567_s30 = smov 8  }
 0x1a8   : > { %444 = dma.vmem_to_hbm [thread:$0]  (%p626_p5), %s669_s5, 256, %s674_s9, %s676_s10, %s566_s29, %s566_s29, %s567_s30  }
 0x1a9 PF: > { %p450_p1 = scmp.ge.s32.totalorder %s561_s15, 2  ;;  %s346_s4 = sand.u32 1, %s549_s12  }
 0x1aa   : > { %s347_s6 = scalar_lea.sflag [#allocation3], %s346_s4 }
 0x1ab   : > { %p447_p2 = pnand %p450_p1, %p630_p6 }
 0x1ad   : > { %544 = dma.done.wait (!%p447_p2), %s347_s6, 256  }
 0x1ae   : > { %546 = vsyncadd (!%p447_p2), %s347_s6, 4294967040  ;;  %p13_p3 = scmp.ge.s32.totalorder %s613_s18, 4   ;;  %s723_s12 = smov %s553_s13 }
 0x1af   : > { %s724_s13 = smov %s557_s14  ;;  %s725_s14 = smov %s624_s21 }
 0x1b0   : > { %s726_s15 = smov %s613_s18  ;;  %15 = sbr.rel (!%p13_p3) target bundleno = 3 (0x3), region = 67 }
 0x1b7   :  { %352 = vsyncpa [#allocation3], 1 }
 0x1b8   :  { %354 = vsyncpa [#allocation3 + $0x1], 1 }

</bundles_post_ra>
